<compile_context>
chip_gen: v7x
topology: tpu7x:2x2x1
jax: 0.10.0
libtpu: 0.0.40
codegen_flags: <defaults>
</compile_context>

<pallas_src>
import jax
import jax.numpy as jnp
from jax.experimental import pallas as pl
from jax.experimental.pallas import tpu as pltpu

_LANES = 128              # vreg lane width
_SUBLANES = 8             # vreg sublane count (f32)
_NUM_SLICES = 2           # leading "parallel" grid axis (2 TCs on v7x; no-op elsewhere)
_TARGET_BLOCK_ROWS = 2048 # 2048 x 128 f32 = 1 MiB per input tile (safe for all VMEM defaults)


def _round_up(x, m):
    return ((x + m - 1) // m) * m


def _make_kernel(apply_input, apply_target, need_mask_sum, block_rows):
    groups = block_rows // _SUBLANES

    def kernel(x_ref, y_ref, m_ref, sq_ref, msum_ref=None):
        i = pl.program_id(1)  # inner ("arbitrary") accumulation axis

        @pl.when(i == 0)
        def _init():
            sq_ref[...] = jnp.zeros_like(sq_ref)
            if need_mask_sum:
                msum_ref[...] = jnp.zeros_like(msum_ref)

        m = m_ref[...].astype(jnp.float32)
        x = x_ref[...].astype(jnp.float32)
        y = y_ref[...].astype(jnp.float32)

        if apply_input and apply_target:
            d = (x - y) * m            # fused: (x*m - y*m) == (x - y)*m
        else:
            if apply_input:
                x = x * m
            if apply_target:
                y = y * m
            d = x - y

        # Fold the (block_rows, 128) tile into a vreg-shaped (8, 128) partial sum
        # using pure VPU adds (no cross-lane/sublane XLU work per step).
        dd = (d * d).reshape(groups, _SUBLANES, _LANES)
        sq_ref[...] += jnp.sum(dd, axis=0)
        if need_mask_sum:
            mm = m.reshape(groups, _SUBLANES, _LANES)
            msum_ref[...] += jnp.sum(mm, axis=0)

    return kernel


def masked_assessment(inputs, mask, apply, reduction="mean"):
    """JAX/Pallas equivalent of MaskedAssessment(MSELoss(reduction='sum')).forward."""
    if not apply:
        raise ValueError("Input argument 'apply' must be a non-empty list of keys.")
    if reduction not in ("sum", "mean"):
        raise ValueError("reduction must be 'sum' or 'mean'")

    pred = inputs["input"]
    target = inputs["target"]
    assert mask.shape == pred.shape and target.shape == pred.shape

    apply_input = "input" in apply
    apply_target = "target" in apply
    need_mask_sum = reduction == "mean"

    # ---- flatten to a lane-dense, zero-padded 2D layout ----------------------
    # Zero padding is exact: padded diff and padded mask contribute 0 to both sums.
    n = pred.size
    rows_needed = -(-n // _LANES)
    block_rows = min(_TARGET_BLOCK_ROWS, _round_up(rows_needed, 32))
    total_rows = _round_up(rows_needed, _NUM_SLICES * block_rows)
    padded_n = total_rows * _LANES

    def _prep(a):
        flat = a.reshape(-1)
        flat = jnp.pad(flat, (0, padded_n - n))
        return flat.reshape(total_rows, _LANES)

    x2d = _prep(pred)
    y2d = _prep(target)
    m2d = _prep(mask)  # kept in caller dtype (bool/int8/bf16/f32); cast in-kernel

    inner = total_rows // (_NUM_SLICES * block_rows)

    in_spec = pl.BlockSpec((block_rows, _LANES), lambda c, i: (c * inner + i, 0))
    out_spec = pl.BlockSpec((None, _SUBLANES, _LANES), lambda c, i: (c, 0, 0))
    out_shape = jax.ShapeDtypeStruct((_NUM_SLICES, _SUBLANES, _LANES), jnp.float32)

    out_specs = (out_spec, out_spec) if need_mask_sum else (out_spec,)
    out_shapes = (out_shape, out_shape) if need_mask_sum else (out_shape,)

    kernel = _make_kernel(apply_input, apply_target, need_mask_sum, block_rows)

    results = pl.pallas_call(
        kernel,
        grid=(_NUM_SLICES, inner),
        in_specs=[in_spec, in_spec, in_spec],
        out_specs=out_specs,
        out_shape=out_shapes,
        compiler_params=pltpu.CompilerParams(
            # Leading axis parallel (v7x 2-TC sharding); inner axis accumulates.
            dimension_semantics=("parallel", "arbitrary"),
            # 3 inputs x 2 buffers x 1 MiB = 6 MiB pipeline + intermediates; plenty.
            vmem_limit_bytes=32 * 1024 * 1024,
        ),
    )(x2d, y2d, m2d)

    if need_mask_sum:
        sq_part, msum_part = results
        sum_assessment = jnp.sum(sq_part)
        mask_sum = jnp.sum(msum_part)
        normalize = 1
        for s in inputs[apply[0]].shape[1:-1]:
            normalize *= s
        return sum_assessment / (normalize * mask_sum)
    else:
        (sq_part,) = results
        return jnp.sum(sq_part)


if __name__ == "__main__":
    key = jax.random.PRNGKey(0)
    k1, k2, k3 = jax.random.split(key, 3)

    B, S, D = 2, 8, 32
    pred = jax.random.normal(k1, (B, S, D), dtype=jnp.float32)
    target = jax.random.normal(k2, (B, S, D), dtype=jnp.float32)
    mask = (jax.random.uniform(k3, (B, S, D)) > 0.5).astype(jnp.float32)

    inputs = {"input": pred, "target": target}

    # reduction='mean', both inputs masked
    out_mean = masked_assessment(inputs, mask, ["input", "target"], reduction="mean")
    # reduction='sum', both inputs masked
    out_sum = masked_assessment(inputs, mask, ["input", "target"], reduction="sum")
    # only 'input' masked
    out_partial = masked_assessment(inputs, mask, ["input"], reduction="mean")

    out_mean = jax.block_until_ready(out_mean)
    out_sum = jax.block_until_ready(out_sum)
    out_partial = jax.block_until_ready(out_partial)

    # Pure-JAX references mirroring the PyTorch forward exactly.
    ref_sum = jnp.sum(((pred * mask) - (target * mask)) ** 2)
    ref_mean = ref_sum / (S * jnp.sum(mask))
    ref_partial = jnp.sum(((pred * mask) - target) ** 2) / (S * jnp.sum(mask))

    assert jnp.allclose(out_mean, ref_mean, rtol=1e-5, atol=1e-6), (out_mean, ref_mean)
    assert jnp.allclose(out_sum, ref_sum, rtol=1e-5, atol=1e-5), (out_sum, ref_sum)
    assert jnp.allclose(out_partial, ref_partial, rtol=1e-5, atol=1e-6), (out_partial, ref_partial)

    print("KERNEL_OK")
</pallas_src>

<mosaic_0001>
module attributes {stable_mosaic.version = 11 : i64} {
  func.func @kernel(%arg0: i32, %arg1: i32, %arg2: memref<32x128xf32, #tpu.memory_space<vmem>>, %arg3: memref<32x128xf32, #tpu.memory_space<vmem>>, %arg4: memref<32x128xf32, #tpu.memory_space<vmem>>, %arg5: memref<1x8x128xf32, #tpu.memory_space<vmem>>, %arg6: memref<1x8x128xf32, #tpu.memory_space<vmem>>) attributes {dimension_semantics = [#tpu.dimension_semantics<parallel>, #tpu.dimension_semantics<arbitrary>], iteration_bounds = array<i64: 2, 1>, scalar_prefetch = 0 : i64, scratch_operands = 0 : i64, tpu.core_type = #tpu.core_type<tc>, window_params = [{transform_indices = @transform_0, window_bounds = array<i64: 32, 128>}, {transform_indices = @transform_1, window_bounds = array<i64: 32, 128>}, {transform_indices = @transform_2, window_bounds = array<i64: 32, 128>}, {transform_indices = @transform_3, window_bounds = array<i64: 1, 8, 128>}, {transform_indices = @transform_4, window_bounds = array<i64: 1, 8, 128>}]} {
    %c0_i32 = arith.constant 0 : i32
    %0 = arith.cmpi eq, %arg1, %c0_i32 : i32
    %1 = arith.extui %0 : i1 to i32
    %c0_i32_0 = arith.constant 0 : i32
    %2 = arith.cmpi ne, %1, %c0_i32_0 : i32
    scf.if %2 {
      %cst_19 = arith.constant 0.000000e+00 : f32
      %25 = vector.broadcast %cst_19 : f32 to vector<8x128xf32>
      %c0_20 = arith.constant 0 : index
      %c0_21 = arith.constant 0 : index
      %c0_22 = arith.constant 0 : index
      %26 = vector.load %arg5[%c0_20, %c0_21, %c0_22] : memref<1x8x128xf32, #tpu.memory_space<vmem>>, vector<1x8x128xf32>
      %27 = vector.shape_cast %26 : vector<1x8x128xf32> to vector<8x128xf32>
      %28 = vector.shape_cast %25 : vector<8x128xf32> to vector<1x8x128xf32>
      tpu.vector_store %arg5[%c0_20, %c0_21, %c0_22], %28 {strides = array<i32>} : memref<1x8x128xf32, #tpu.memory_space<vmem>>, vector<1x8x128xf32>,
      %cst_23 = arith.constant 0.000000e+00 : f32
      %29 = vector.broadcast %cst_23 : f32 to vector<8x128xf32>
      %c0_24 = arith.constant 0 : index
      %c0_25 = arith.constant 0 : index
      %c0_26 = arith.constant 0 : index
      %30 = vector.load %arg6[%c0_24, %c0_25, %c0_26] : memref<1x8x128xf32, #tpu.memory_space<vmem>>, vector<1x8x128xf32>
      %31 = vector.shape_cast %30 : vector<1x8x128xf32> to vector<8x128xf32>
      %32 = vector.shape_cast %29 : vector<8x128xf32> to vector<1x8x128xf32>
      tpu.vector_store %arg6[%c0_24, %c0_25, %c0_26], %32 {strides = array<i32>} : memref<1x8x128xf32, #tpu.memory_space<vmem>>, vector<1x8x128xf32>,
    } else {
    }
    %c0 = arith.constant 0 : index
    %c0_1 = arith.constant 0 : index
    %3 = vector.load %arg4[%c0, %c0_1] : memref<32x128xf32, #tpu.memory_space<vmem>>, vector<32x128xf32>
    %c0_2 = arith.constant 0 : index
    %c0_3 = arith.constant 0 : index
    %4 = vector.load %arg2[%c0_2, %c0_3] : memref<32x128xf32, #tpu.memory_space<vmem>>, vector<32x128xf32>
    %c0_4 = arith.constant 0 : index
    %c0_5 = arith.constant 0 : index
    %5 = vector.load %arg3[%c0_4, %c0_5] : memref<32x128xf32, #tpu.memory_space<vmem>>, vector<32x128xf32>
    %6 = arith.subf %4, %5 : vector<32x128xf32>
    %7 = arith.mulf %6, %3 : vector<32x128xf32>
    %8 = arith.mulf %7, %7 : vector<32x128xf32>
    %9 = vector.shape_cast %8 : vector<32x128xf32> to vector<4x8x128xf32>
    %c0_6 = arith.constant 0 : index
    %c0_7 = arith.constant 0 : index
    %c0_8 = arith.constant 0 : index
    %10 = vector.load %arg5[%c0_6, %c0_7, %c0_8] : memref<1x8x128xf32, #tpu.memory_space<vmem>>, vector<1x8x128xf32>
    %11 = vector.shape_cast %10 : vector<1x8x128xf32> to vector<8x128xf32>
    %cst = arith.constant dense<0.000000e+00> : vector<8x128xf32>
    %12 = vector.multi_reduction <add>, %9, %cst [0] : vector<4x8x128xf32> to vector<8x128xf32>
    %13 = arith.addf %11, %12 : vector<8x128xf32>
    %c0_9 = arith.constant 0 : index
    %c0_10 = arith.constant 0 : index
    %c0_11 = arith.constant 0 : index
    %14 = vector.load %arg5[%c0_9, %c0_10, %c0_11] : memref<1x8x128xf32, #tpu.memory_space<vmem>>, vector<1x8x128xf32>
    %15 = vector.shape_cast %14 : vector<1x8x128xf32> to vector<8x128xf32>
    %16 = vector.shape_cast %13 : vector<8x128xf32> to vector<1x8x128xf32>
    tpu.vector_store %arg5[%c0_9, %c0_10, %c0_11], %16 {strides = array<i32>} : memref<1x8x128xf32, #tpu.memory_space<vmem>>, vector<1x8x128xf32>,
    %17 = vector.shape_cast %3 : vector<32x128xf32> to vector<4x8x128xf32>
    %c0_12 = arith.constant 0 : index
    %c0_13 = arith.constant 0 : index
    %c0_14 = arith.constant 0 : index
    %18 = vector.load %arg6[%c0_12, %c0_13, %c0_14] : memref<1x8x128xf32, #tpu.memory_space<vmem>>, vector<1x8x128xf32>
    %19 = vector.shape_cast %18 : vector<1x8x128xf32> to vector<8x128xf32>
    %cst_15 = arith.constant dense<0.000000e+00> : vector<8x128xf32>
    %20 = vector.multi_reduction <add>, %17, %cst_15 [0] : vector<4x8x128xf32> to vector<8x128xf32>
    %21 = arith.addf %19, %20 : vector<8x128xf32>
    %c0_16 = arith.constant 0 : index
    %c0_17 = arith.constant 0 : index
    %c0_18 = arith.constant 0 : index
    %22 = vector.load %arg6[%c0_16, %c0_17, %c0_18] : memref<1x8x128xf32, #tpu.memory_space<vmem>>, vector<1x8x128xf32>
    %23 = vector.shape_cast %22 : vector<1x8x128xf32> to vector<8x128xf32>
    %24 = vector.shape_cast %21 : vector<8x128xf32> to vector<1x8x128xf32>
    tpu.vector_store %arg6[%c0_16, %c0_17, %c0_18], %24 {strides = array<i32>} : memref<1x8x128xf32, #tpu.memory_space<vmem>>, vector<1x8x128xf32>,
    return
  }
  func.func @transform_0(%arg0: i32, %arg1: i32) -> (i32, i32) {
    %c1_i32 = arith.constant 1 : i32
    %0 = arith.muli %arg0, %c1_i32 : i32
    %1 = arith.addi %0, %arg1 : i32
    %c0_i32 = arith.constant 0 : i32
    %c0_i32_0 = arith.constant 0 : i32
    return %1, %c0_i32 : i32, i32
  }
  func.func @transform_1(%arg0: i32, %arg1: i32) -> (i32, i32) {
    %c1_i32 = arith.constant 1 : i32
    %0 = arith.muli %arg0, %c1_i32 : i32
    %1 = arith.addi %0, %arg1 : i32
    %c0_i32 = arith.constant 0 : i32
    %c0_i32_0 = arith.constant 0 : i32
    return %1, %c0_i32 : i32, i32
  }
  func.func @transform_2(%arg0: i32, %arg1: i32) -> (i32, i32) {
    %c1_i32 = arith.constant 1 : i32
    %0 = arith.muli %arg0, %c1_i32 : i32
    %1 = arith.addi %0, %arg1 : i32
    %c0_i32 = arith.constant 0 : i32
    %c0_i32_0 = arith.constant 0 : i32
    return %1, %c0_i32 : i32, i32
  }
  func.func @transform_3(%arg0: i32, %arg1: i32) -> (i32, i32, i32) {
    %c0_i32 = arith.constant 0 : i32
    %c0_i32_0 = arith.constant 0 : i32
    %c0_i32_1 = arith.constant 0 : i32
    return %arg0, %c0_i32, %c0_i32_0 : i32, i32, i32
  }
  func.func @transform_4(%arg0: i32, %arg1: i32) -> (i32, i32, i32) {
    %c0_i32 = arith.constant 0 : i32
    %c0_i32_0 = arith.constant 0 : i32
    %c0_i32_1 = arith.constant 0 : i32
    return %arg0, %c0_i32, %c0_i32_0 : i32, i32, i32
  }
}

</mosaic_0001>

<bundles_post_ra>
// kernel: tpu_custom_call.1
= control target key start
LH: loop header
LB: loop body
LE: loop exit
PB: predicated region body
PF: predicated region fallthrough
CT: control target
= control target key end

     0   :  { %s1225_s0 = inlined_call_operand.hbm [shape: f32[64,128], index: 0, kind: input, shape index: {}]   ;;  %s1226_s1 = inlined_call_operand.hbm [shape: f32[64,128], index: 1, kind: input, shape index: {}]   ;;  %s1227_s2 = inlined_call_operand.hbm [shape: f32[64,128], index: 2, kind: input, shape index: {}]   ;;  %s1228_s3 = inlined_call_operand.hbm [shape: f32[2,8,128], index: 3, kind: output, shape index: {0}]   ;;  %s1229_s4 = inlined_call_operand.hbm [shape: f32[2,8,128], index: 4, kind: output, shape index: {1}]  }
   0x1   :  { %1241 = sst [smem:[#allocation19_spill]] %s1226_s1 }
   0x2   :  { %10 = vsyncpa [#allocation3], 0 }
   0x3   :  { %12 = vsyncpa [#allocation3 + $0x1], 0 }
   0x4   :  { %13 = vsyncpa [#allocation6], 0 }
   0x5   :  { %15 = vsyncpa [#allocation6 + $0x1], 0 }
   0x6   :  { %16 = vsyncpa [#allocation4], 0 }
   0x7   :  { %18 = vsyncpa [#allocation4 + $0x1], 0 }
   0x8   :  { %19 = vsyncpa [#allocation10], 0 }
   0x9   :  { %21 = vsyncpa [#allocation10 + $0x1], 0  ;;  %s911_s15 = smov 0   ;;  %s913_s16 = smov 0  }
   0xa   :  { %s915_s17 = smov 0   ;;  %s917_s18 = smov 0  }
   0xb   :  { %s919_s19 = smov 0   ;;  %s921_s20 = smov 0  }
   0xc LB: > { %1242 = sst [smem:[#allocation15_spill]] %s873_s19  ;;  %s942_s21 = sadd.s32 4294967295, %s877_s20   ;;  %s877_s20 = sphi %s921_s20, %s27_s20   ;;  %s873_s19 = sphi %s919_s19, %s1267_s19   ;;  %s869_s18 = sphi %s917_s18, %s1266_s18   ;;  %s865_s17 = sphi %s915_s17, %s1270_s17   ;;  %s861_s16 = sphi %s913_s16, %s1269_s16   ;;  %s857_s15 = sphi %s911_s15, %s1268_s15  }
   0xd   : > { %1243 = sst [smem:[#allocation16_spill]] %s877_s20  ;;  %s562_s22 = sadd.s32 4294967294, %s877_s20  }
   0xe   : > { %s39_s23 = sadd.s32 1, %s873_s19  ;;  %s48_s24 = sadd.s32 1, %s865_s17 }
   0xf   : > { %p41_p0 = scmp.ge.s32.totalorder %s39_s23, 2  ;;  %p55_p1 = scmp.ne.s32.totalorder %s865_s17, %s861_s16 }
  0x10   : > { %p56_p2 = scmp.eq.s32.totalorder %s877_s20, 0  ;;  %p61_p3 = scmp.ne.s32.totalorder %s861_s16, %s857_s15 }
  0x11   : > { %s1272_s23 = smov (%p41_p0, %s39_s23), 0  ;;  %p62_p5 = scmp.eq.s32.totalorder %s942_s21, 0 }
  0x12   : > { %1244 = sst [smem:[#allocation17_spill]] %s1272_s23  ;;  %p954_p4 = por %p56_p2, %p55_p1 }
  0x13   : > { %s45_s26 = ssub.s32 %s873_s19, %s1272_s23  ;;  %p141_p6 = scmp.eq.s32.totalorder %s942_s21, 1 }
  0x14   : > { %p46_p7 = scmp.eq.s32.totalorder %s45_s26, 0  ;;  %p962_p8 = por %p62_p5, %p61_p3 }
  0x15   : > { %p966_p9 = por %p141_p6, %p55_p1  ;;  %p147_p10 = scmp.eq.s32.totalorder %s562_s22, 1 }
  0x16   : > { %s1246_s27 = scalar_select %p962_p8, 1, 0 }
  0x17   : > { %s1247_s28 = scalar_select %p966_p9, 1, 0 }
  0x18   : > { %s971_s29 = scalar_select %p46_p7, %s865_s17, %s48_s24  }
  0x19   : > { %p973_p11 = por %p147_p10, %p61_p3  ;;  %p616_p13 = scmp.lt.s32.totalorder %s877_s20, 2 }
  0x1a   : > { %1248 = sst [smem:[#allocation18_spill]] %s971_s29  ;;  %s1230_s5 = sand.u32 1, %s865_s17  }
  0x1b   : > { %s1249_s30 = scalar_select %p973_p11, 1, 0 }
  0x1c   : > { %s982_s6 = sshll.u32 %s1230_s5, 5  ;;  %s985_s7 = sshll.u32 %s873_s19, 9 }
  0x1d   : > { %p989_p0 = pnand %p616_p13, %p954_p4  ;;  %s215_s9 = sand.u32 1, %s877_s20  }
  0x1e   : > { %s1251_s1 = sld [smem:[#allocation19_spill]]  ;;  %s219_s13 = scalar_lea.vmem [#allocation5], %s982_s6 }
  0x1f   : > { %s227_s14 = sshll.u32 %s219_s13, 4  ;;  %s1005_s22 = scalar_lea.sflag [#allocation6], %s215_s9  ;;  %s1002_s14 = int_to_ptr.vmem [resolvable:$true] %s227_s14 }
  0x20   : > { %p1011_p4 = pneg %p989_p0 }
  0x24   : > { %s998_s12 = scalar_lea.hbm %s1251_s1, %s985_s7  ;;  %s674_s11 = scalar_lea.hbm %s1251_s1, 1024 }
  0x25   : > { %s669_s24 = scalar_lea.hbm %s998_s12, 512  ;;  %p675_p7 = scmp.lt.u32.totalorder %s998_s12, %s1251_s1 }
  0x26   : > { %p670_p3 = scmp.ne.s32.totalorder %s998_s12, %s669_s24  ;;  %p676_p10 = scmp.lt.u32.totalorder %s674_s11, %s669_s24 }
  0x27   : > { %p678_p12 = scmp.lt.u32.totalorder %s669_s24, %s998_s12 }
  0x28   : > { %p672_p5 = pnand %p1011_p4, %p670_p3  ;;  %p677_p13 = por %p676_p10, %p675_p7 }
  0x2a   : > { %p673_p6 = pneg %p672_p5  ;;  %p679_p1 = por %p678_p12, %p677_p13 }
  0x2c   : > { %p680_p2 = pnand %p679_p1, %p673_p6 }
  0x2e   : > { %683 = shalt.err (!%p680_p2)
}
  0x2f   : > { %s684_s9 = scalar_lea.vmem %s1002_s14, 512  ;;  %s879_s26 = smov [#allocation5]  }
  0x30   : > { %p685_p3 = scmp.ne.s32.totalorder %s1002_s14, %s684_s9  ;;  %s689_s10 = sshll.u32 %s879_s26, 4  ;;  %s690_s10 = int_to_ptr.vmem [resolvable:$false] %s689_s10 }
  0x31   : > { %s691_s5 = scalar_lea.vmem %s690_s10, 1024  ;;  %p692_p9 = scmp.lt.s32.totalorder %s1002_s14, %s690_s10 }
  0x32   : > { %p687_p5 = pnand %p685_p3, %p1011_p4  ;;  %p693_p8 = scmp.lt.s32.totalorder %s691_s5, %s684_s9 }
  0x34   : > { %p688_p11 = pneg %p687_p5  ;;  %p694_p7 = por %p693_p8, %p692_p9 }
  0x36   : > { %p695_p10 = pnand %p694_p7, %p688_p11 }
  0x38   : > { %698 = shalt.err (!%p695_p10)
}
  0x39   : > { %s1233_s24 = smov 128   ;;  %s1235_s11 = smov 8  }
  0x3a   : > { %605 = dma.hbm_to_vmem [thread:$0]  (!%p989_p0), %s998_s12, 512, %s1002_s14, %s1005_s22, %s1233_s24, %s1233_s24, %s1235_s11  }
  0x3b   : > { %p1253_p8 = scmp.lt.s32.totalorder %s877_s20, 3  ;;  %p1254_p9 = scmp.ge.s32.totalorder %s877_s20, 1 }
  0x3c   : > { %s1050_s10 = scalar_lea.hbm %s1225_s0, %s985_s7  ;;  %s197_s5 = scalar_lea.vmem [#allocation2], %s982_s6 }
  0x3d   : > { %p1042_p11 = pnand %p1254_p9, %p1253_p8  ;;  %s205_s1 = sshll.u32 %s197_s5, 4  ;;  %s1053_s1 = int_to_ptr.vmem [resolvable:$true] %s205_s1 }
  0x3e   : > { %s1059_s24 = scalar_lea.hbm %s1227_s2, %s985_s7  ;;  %s1256_s11 = sand.u32 1, %s865_s17  }
  0x3f   : > { %s1255_s13 = scalar_select %p1042_p11, 1, 0 }
  0x40   : > { %s1063_s23 = scalar_lea.sflag [#allocation3], %s1256_s11  ;;  %s699_s19 = scalar_lea.hbm %s1050_s10, 512 }
  0x41   : > { %p700_p12 = scmp.ne.s32.totalorder %s1050_s10, %s699_s19  ;;  %s704_s29 = scalar_lea.hbm %s1225_s0, 1024 }
  0x42   : > { %p705_p6 = scmp.lt.u32.totalorder %s1050_s10, %s1225_s0  ;;  %p706_p13 = scmp.lt.u32.totalorder %s704_s29, %s699_s19 }
  0x43   : > { %p702_p1 = pnand %p700_p12, %p1011_p4  ;;  %p708_p5 = scmp.lt.u32.totalorder %s699_s19, %s1050_s10 }
  0x44   : > { %p707_p3 = por %p706_p13, %p705_p6 }
  0x45   : > { %p703_p2 = pneg %p702_p1 }
  0x46   : > { %p709_p7 = por %p708_p5, %p707_p3 }
  0x48   : > { %p710_p10 = pnand %p709_p7, %p703_p2 }
  0x4a   : > { %713 = shalt.err (!%p710_p10)
}
  0x4b   : > { %s714_s7 = scalar_lea.vmem %s1053_s1, 512  ;;  %s882_s11 = smov [#allocation2]  }
  0x4c   : > { %p715_p8 = scmp.ne.s32.totalorder %s1053_s1, %s714_s7  ;;  %s719_s12 = sshll.u32 %s882_s11, 4  ;;  %s720_s12 = int_to_ptr.vmem [resolvable:$false] %s719_s12 }
  0x4d   : > { %s721_s20 = scalar_lea.vmem %s720_s12, 1024  ;;  %p722_p1 = scmp.lt.s32.totalorder %s1053_s1, %s720_s12 }
  0x4e   : > { %p717_p9 = pnand %p715_p8, %p1011_p4  ;;  %p723_p11 = scmp.lt.s32.totalorder %s721_s20, %s714_s7 }
  0x50   : > { %p718_p12 = pneg %p717_p9  ;;  %p724_p6 = por %p723_p11, %p722_p1 }
  0x52   : > { %p725_p13 = pnand %p724_p6, %p718_p12 }
  0x54   : > { %728 = shalt.err (!%p725_p13)
}
  0x55   : > { %s1257_s19 = smov 8   ;;  %s1258_s29 = smov 128  }
  0x56   : > { %602 = dma.hbm_to_vmem [thread:$0]  (!%p989_p0), %s1050_s10, 512, %s1053_s1, %s1063_s23, %s1258_s29, %s1258_s29, %s1257_s19  }
  0x57   : > { %s241_s14 = scalar_lea.vmem [#allocation7], %s982_s6  ;;  %s729_s26 = scalar_lea.hbm %s1059_s24, 512 }
  0x58   : > { %s249_s9 = sshll.u32 %s241_s14, 4  ;;  %p730_p11 = scmp.ne.s32.totalorder %s1059_s24, %s729_s26  ;;  %s1091_s9 = int_to_ptr.vmem [resolvable:$true] %s249_s9 }
  0x59   : > { %s734_s11 = scalar_lea.hbm %s1227_s2, 1024  ;;  %p735_p5 = scmp.lt.u32.totalorder %s1059_s24, %s1227_s2 }
  0x5a   : > { %p732_p2 = pnand %p730_p11, %p1011_p4  ;;  %p736_p7 = scmp.lt.u32.totalorder %s734_s11, %s729_s26 }
  0x5b   : > { %p738_p8 = scmp.lt.u32.totalorder %s729_s26, %s1059_s24 }
  0x5c   : > { %p733_p3 = pneg %p732_p2  ;;  %p737_p10 = por %p736_p7, %p735_p5 }
  0x5e   : > { %p739_p9 = por %p738_p8, %p737_p10 }
  0x60   : > { %p740_p12 = pnand %p739_p9, %p733_p3 }
  0x62   : > { %743 = shalt.err (!%p740_p12)
}
  0x63   : > { %s744_s1 = scalar_lea.vmem %s1091_s9, 512  ;;  %s883_s23 = smov [#allocation7]  }
  0x64   : > { %p745_p1 = scmp.ne.s32.totalorder %s1091_s9, %s744_s1  ;;  %s749_s6 = sshll.u32 %s883_s23, 4  ;;  %s750_s6 = int_to_ptr.vmem [resolvable:$false] %s749_s6 }
  0x65   : > { %s751_s10 = scalar_lea.vmem %s750_s6, 1024  ;;  %p752_p11 = scmp.lt.s32.totalorder %s1091_s9, %s750_s6 }
  0x66   : > { %p747_p6 = pnand %p745_p1, %p1011_p4  ;;  %p753_p2 = scmp.lt.s32.totalorder %s751_s10, %s744_s1 }
  0x68   : > { %p748_p13 = pneg %p747_p6  ;;  %p754_p5 = por %p753_p2, %p752_p11 }
  0x6a   : > { %p755_p7 = pnand %p754_p5, %p748_p13 }
  0x6c   : > { %758 = shalt.err (!%p755_p7)
}
  0x6d   : > { %608 = dma.hbm_to_vmem [thread:$0]  (!%p989_p0), %s1059_s24, 512, %s1091_s9, %s1005_s22, %s1258_s29, %s1258_s29, %s1257_s19  }
  0x6e   : > { %p1259_p4 = scmp.ne.s32.totalorder %s1255_s13, 0 }
  0x6f   : > { %s1121_s25 = sand.u32 (!%p1259_p4), 1, %s861_s16   ;;  %p1260_p3 = scmp.ne.s32.totalorder (!%p1259_p4), %s1246_s27, 0 }
  0x70   : > { %261 = sbr.rel (%p1259_p4) target bundleno = 174 (0xae), region = 32  ;;  %s575_s14 = sshll.u32 (!%p1259_p4), %s1121_s25, 5 }
  0x71   : > { %s264_s26 = scalar_lea.sflag (!%p1259_p4), [#allocation3], %s1121_s25  ;;  %s267_s5 = scalar_lea.vmem (!%p1259_p4), [#allocation2], %s575_s14 }
  0x77   : > { %840 = dma.done.wait (%p1260_p3), %s264_s26, 512  }
  0x78   : > { %842 = vsyncadd (%p1260_p3), %s264_s26, 4294966784  ;;  %s272_s8 = sand.u32 1, %s942_s21   ;;  %s276_s24 = scalar_lea.vmem [#allocation5], %s575_s14 }
  0x79   : > { %s273_s22 = scalar_lea.sflag [#allocation6], %s272_s8 }
  0x7a   : > { %844 = dma.done.wait (%p1260_p3), %s273_s22, 1024  }
  0x7b   : > { %846 = vsyncadd (%p1260_p3), %s273_s22, 4294966272  ;;  %s578_s13 = sshll.u32 %s1121_s25, 3  ;;  %s285_s19 = scalar_lea.vmem [#allocation7], %s575_s14  ;;  %v341_v4 = vld [vmem:[%s267_s5] sm:$0xff]  ;;  %v342_v5 = vld [vmem:[%s267_s5 + $0x8] sm:$0xff] }
  0x7c   : > { %v337_v0 = vld [vmem:[%s285_s19] sm:$0xff]  ;;  %v338_v1 = vld [vmem:[%s285_s19 + $0x8] sm:$0xff]  ;;  %v339_v2 = vld [vmem:[%s285_s19 + $0x10] sm:$0xff]  ;;  %s582_s21 = sshll.u32 %s869_s18, 7  ;;  %s324_s27 = scalar_lea.vmem [#allocation9], %s578_s13 }
  0x7d   : > { %v340_v3 = vld [vmem:[%s285_s19 + $0x18] sm:$0xff]  ;;  %v368_v6 = vadd.f32 %v338_v1, %v337_v0  ;;  %v343_v7 = vld [vmem:[%s267_s5 + $0x10] sm:$0xff]  ;;  %v345_v9 = vld [vmem:[%s276_s24] sm:$0xff]  ;;  %s405_s29 = sshll.u32 %s324_s27, 4  ;;  %s1143_s11 = scalar_lea.hbm %s1229_s4, %s582_s21  ;;  %s1145_s29 = int_to_ptr.vmem [resolvable:$true] %s405_s29 }
  0x7e   : > { %v344_v8 = vld [vmem:[%s267_s5 + $0x18] sm:$0xff]  ;;  %v346_v10 = vld [vmem:[%s276_s24 + $0x8] sm:$0xff]  ;;  %v347_v11 = vld [vmem:[%s276_s24 + $0x10] sm:$0xff]  ;;  %v349_v13 = vsub.f32 %v341_v4, %v345_v9  ;;  %s379_s12 = scalar_lea.sflag [#allocation10], %s1121_s25  ;;  %s759_s20 = scalar_lea.vmem %s1145_s29, 128 }
  0x7f   : > { %v348_v12 = vld [vmem:[%s276_s24 + $0x18] sm:$0xff]  ;;  %v369_v14 = vadd.f32 %v368_v6, %v339_v2  ;;  %v350_v15 = vsub.f32 %v342_v5, %v346_v10  ;;  %v351_v16 = vsub.f32 %v343_v7, %v347_v11  ;;  %p760_p0 = scmp.ne.s32.totalorder %s1145_s29, %s759_s20  ;;  %p1261_p10 = scmp.ne.s32.totalorder %s1247_s28, 0 }
  0x80   : > { %v352_v17 = vsub.f32 %v344_v8, %v348_v12  ;;  %v353_v18 = vmul.f32 %v349_v13, %v337_v0  ;;  %s884_s1 = smov [#allocation9]  }
  0x81   : > { %v370_v19 = vadd.f32 %v369_v14, %v340_v3  ;;  %v354_v20 = vmul.f32 %v350_v15, %v338_v1  ;;  %v355_v21 = vmul.f32 %v351_v16, %v339_v2  ;;  %p761_p8 = pnand %p760_p0, %p1261_p10  ;;  %s763_s23 = sshll.u32 %s884_s1, 4  ;;  %s764_s23 = int_to_ptr.vmem [resolvable:$false] %s763_s23 }
  0x82   : > { %v356_v22 = vmul.f32 %v352_v17, %v340_v3  ;;  %v357_v23 = vmul.f32 %v353_v18, %v353_v18  ;;  %s765_s6 = scalar_lea.vmem %s764_s23, 256  ;;  %p766_p12 = scmp.lt.s32.totalorder %s1145_s29, %s764_s23 }
  0x83   : > { %v358_v24 = vmul.f32 %v354_v20, %v354_v20  ;;  %v359_v25 = vmul.f32 %v355_v21, %v355_v21  ;;  %372 = vst [vmem:[%s324_s27] sm:$0xff] %v370_v19  ;;  %p762_p9 = pneg %p761_p8  ;;  %p767_p1 = scmp.lt.s32.totalorder %s765_s6, %s759_s20 }
  0x84   : > { %v360_v26 = vmul.f32 %v356_v22, %v356_v22 }
  0x85   : > { %v362_v27 = vadd.f32 %v358_v24, %v357_v23  ;;  %p768_p6 = por %p767_p1, %p766_p12 }
  0x87   : > { %p769_p13 = pnand %p768_p6, %p762_p9 }
  0x89   : > { %772 = shalt.err (!%p769_p13)
}
  0x8a   : > { %s773_s10 = scalar_lea.hbm %s1143_s11, 128  ;;  %s777_s5 = scalar_lea.hbm %s1229_s4, 256 }
  0x8b   : > { %p774_p11 = scmp.ne.s32.totalorder %s1143_s11, %s773_s10  ;;  %p778_p7 = scmp.lt.u32.totalorder %s1143_s11, %s1229_s4 }
  0x8c   : > { %p779_p4 = scmp.lt.u32.totalorder %s777_s5, %s773_s10  ;;  %p781_p0 = scmp.lt.u32.totalorder %s773_s10, %s1143_s11 }
  0x8d   : > { %p775_p2 = pnand %p774_p11, %p1261_p10 }
  0x8e   : > { %p780_p3 = por %p779_p4, %p778_p7 }
  0x8f   : > { %p776_p5 = pneg %p775_p2 }
  0x90   : > { %p782_p8 = por %p781_p0, %p780_p3 }
  0x92   : > { %p783_p9 = pnand %p782_p8, %p776_p5 }
  0x94   : > { %786 = shalt.err (!%p783_p9)
}
  0x95   : > { %596 = dma.vmem_to_hbm [thread:$0]  (%p1261_p10), %s1145_s29, 128, %s1143_s11, %s379_s12   ;;  %v363_v28 = vadd.f32 %v362_v27, %v359_v25 }
  0x96   : > { %s317_s24 = scalar_lea.vmem [#allocation8], %s578_s13  ;;  %s1176_s7 = scalar_lea.hbm %s1228_s3, %s582_s21 }
  0x97   : > { %s392_s19 = sshll.u32 %s317_s24, 4  ;;  %v364_v29 = vadd.f32 %v363_v28, %v360_v26  ;;  %s374_s20 = scalar_lea.sflag [#allocation4], %s1121_s25  ;;  %s1178_s19 = int_to_ptr.vmem [resolvable:$true] %s392_s19 }
  0x98   : > { %s787_s1 = scalar_lea.vmem %s1178_s19, 128  ;;  %s885_s13 = smov [#allocation8]  }
  0x99   : > { %366 = vst [vmem:[%s317_s24] sm:$0xff] %v364_v29  ;;  %p788_p12 = scmp.ne.s32.totalorder %s1178_s19, %s787_s1  ;;  %s791_s29 = sshll.u32 %s885_s13, 4  ;;  %s792_s29 = int_to_ptr.vmem [resolvable:$false] %s791_s29 }
  0x9a   : > { %s793_s18 = scalar_lea.vmem %s792_s29, 256  ;;  %p794_p13 = scmp.lt.s32.totalorder %s1178_s19, %s792_s29 }
  0x9b   : > { %p789_p1 = pnand %p788_p12, %p1261_p10  ;;  %p795_p11 = scmp.lt.s32.totalorder %s793_s18, %s787_s1 }
  0x9d   : > { %p790_p6 = pneg %p789_p1  ;;  %p796_p2 = por %p795_p11, %p794_p13 }
  0x9f   : > { %p797_p5 = pnand %p796_p2, %p790_p6 }
  0xa1   : > { %800 = shalt.err (!%p797_p5)
}
  0xa2   : > { %s801_s25 = scalar_lea.hbm %s1176_s7, 128  ;;  %s805_s12 = scalar_lea.hbm %s1228_s3, 256 }
  0xa3   : > { %p802_p7 = scmp.ne.s32.totalorder %s1176_s7, %s801_s25  ;;  %p806_p0 = scmp.lt.u32.totalorder %s1176_s7, %s1228_s3 }
  0xa4   : > { %p807_p8 = scmp.lt.u32.totalorder %s805_s12, %s801_s25  ;;  %p809_p12 = scmp.lt.u32.totalorder %s801_s25, %s1176_s7 }
  0xa5   : > { %p803_p4 = pnand %p802_p7, %p1261_p10 }
  0xa6   : > { %p808_p9 = por %p807_p8, %p806_p0 }
  0xa7   : > { %p804_p3 = pneg %p803_p4 }
  0xa8   : > { %p810_p1 = por %p809_p12, %p808_p9 }
  0xaa   : > { %p811_p6 = pnand %p810_p1, %p804_p3 }
  0xac   : > { %814 = shalt.err (!%p811_p6)
}
  0xad   : > { %595 = dma.vmem_to_hbm [thread:$0]  (%p1261_p10), %s1178_s19, 128, %s1176_s7, %s374_s20  }
  0xae PF: > { %s1262_s10 = sld [smem:[#allocation16_spill]]  ;;  %s417_s14 = sand.u32 1, %s857_s15  }
  0xaf   : > { %p1263_p13 = scmp.ne.s32.totalorder %s1249_s30, 0  ;;  %s418_s26 = scalar_lea.sflag [#allocation4], %s417_s14 }
  0xb4   : > { %p1264_p11 = scmp.ge.s32.totalorder %s1262_s10, 2 }
  0xb6   : > { %p610_p2 = pnand %p1264_p11, %p1263_p13 }
  0xb8   : > { %848 = dma.done.wait (!%p610_p2), %s418_s26, 128  }
  0xb9   : > { %850 = vsyncadd (!%p610_p2), %s418_s26, 4294967168  ;;  %s427_s5 = scalar_lea.sflag [#allocation10], %s417_s14 }
  0xba   : > { %852 = dma.done.wait (!%p610_p2), %s427_s5, 128  }
  0xbb   : > { %854 = vsyncadd (!%p610_p2), %s427_s5, 4294967168  ;;  %s27_s20 = sadd.s32 1, %s1262_s10   ;;  %s1265_s28 = sld [smem:[#allocation18_spill]] }
  0xbc   : > { %p24_p5 = scmp.ge.s32.totalorder %s27_s20, 4   ;;  %s1266_s18 = sld [smem:[#allocation15_spill]] }
  0xbd   : > { %s1267_s19 = sld [smem:[#allocation17_spill]]  ;;  %s1268_s15 = smov %s861_s16 }
  0xbe   : > { %s1269_s16 = smov %s865_s17  ;;  %26 = sbr.rel (!%p24_p5) target bundleno = 12 (0xc), region = 122 }
  0xc1   : > { %s1270_s17 = smov %s1265_s28 }
  0xc5   :  { %432 = vsyncpa [#allocation3], 1 }
  0xc6   :  { %434 = vsyncpa [#allocation3 + $0x1], 1 }
  0xc7   :  { %435 = vsyncpa [#allocation6], 1 }
  0xc8   :  { %437 = vsyncpa [#allocation6 + $0x1], 1 }
  0xc9   :  { %438 = vsyncpa [#allocation4], 1 }
  0xca   :  { %440 = vsyncpa [#allocation4 + $0x1], 1 }
  0xcb   :  { %441 = vsyncpa [#allocation10], 1 }
  0xcc   :  { %443 = vsyncpa [#allocation10 + $0x1], 1 }

</bundles_post_ra>
